<compile_context>
chip_gen: v7x
topology: tpu7x:2x2x1
jax: 0.10.0
libtpu: 0.0.40
codegen_flags: <defaults>
</compile_context>

<pallas_src>
import jax
import jax.numpy as jnp
from jax.experimental import pallas as pl
from jax.experimental.pallas import tpu as pltpu


def _make_kernel(H, kH, sH, Qh, N):
    """Per-batch kernel.  Qh = rows per phase block, N = Wout*Cout."""

    def kernel(x_ref, wt_ref, b_ref, o_ref, acc_ref):
        # x_ref:   (1, H, W*Cin)           one batch element (rows = input rows)
        # wt_ref:  (kH, W*Cin, N)          width-Toeplitz weight, one slab per row-tap
        # b_ref:   (1, N)                  bias tiled over output width
        # o_ref:   (1, sH, Qh, N)          phase-major output block (lane-dense stores)
        # acc_ref: (Qh, N) f32 VMEM        accumulator scratch
        x_rows = x_ref[0]                                    # (H, W*Cin)
        bias_full = jnp.broadcast_to(b_ref[...], (Qh, N))    # hoisted out of the loops

        for ph in range(sH):                    # output row phase: oi % sH == ph
            acc_ref[...] = bias_full            # bias-initialized accumulator
            for t, kh in enumerate(range(ph, kH, sH)):
                # One MXU matmul does the Cin contraction + full width placement
                # for row-tap kh (zeros in Wt realize the kw scatter & stride).
                plane = jnp.dot(x_rows, wt_ref[kh],
                                preferred_element_type=jnp.float32)      # (H, N)
                # Tap kh = ph + t*sH lands on phase rows q = i + t (dense shift).
                acc_ref[t:t + H, :] += plane
            # Single dense store of the whole phase block.
            o_ref[0, ph, :, :] = acc_ref[...]

    return kernel


def _build_width_toeplitz(weight, W, sW, Wout):
    """Wt[kh, j*Cin+ic, (j*sW+kw)*Cout+oc] = weight[ic, oc, kh, kw]; zero elsewhere."""
    Cin, Cout, kH, kW = weight.shape
    wt = jnp.zeros((kH, W * Cin, Wout * Cout), jnp.float32)
    w_khio = jnp.transpose(weight, (3, 2, 0, 1)).astype(jnp.float32)   # (kW, kH, Cin, Cout)
    # TODO(synk): for large W replace this trace-time loop with a vectorized pad/roll
    # construction; it is a one-time parameter transform (cacheable per weight).
    for j in range(W):
        for kw in range(kW):
            oj = j * sW + kw
            wt = wt.at[:, j * Cin:(j + 1) * Cin,
                       oj * Cout:(oj + 1) * Cout].set(w_khio[kw])
    return wt


def gpt_conv_transpose2d(x_nchw, weight, bias, stride):
    """x_nchw: (B, Cin, H, W); weight: (Cin, Cout, kH, kW); bias: (Cout,)."""
    B, Cin, H, W = x_nchw.shape
    Cin_w, Cout, kH, kW = weight.shape
    assert Cin == Cin_w
    sH, sW = stride
    Hout = (H - 1) * sH + kH
    Wout = (W - 1) * sW + kW
    TH = -(-kH // sH)            # max row-taps per phase = ceil(kH / sH)
    Qh = H + TH - 1              # rows per phase block
    N = Wout * Cout              # lane-dense output width
    WCin = W * Cin

    # ---- layout glue (plain JAX) ----
    x_rows = jnp.transpose(x_nchw, (0, 2, 3, 1)).reshape(B, H, WCin).astype(jnp.float32)
    wt = _build_width_toeplitz(weight, W, sW, Wout)                      # (kH, WCin, N)
    bias_wide = jnp.tile(bias.astype(jnp.float32), Wout).reshape(1, N)   # (1, N)

    kernel = _make_kernel(H, kH, sH, Qh, N)

    flops = 2 * B * kH * H * WCin * N
    bytes_accessed = 4 * (x_rows.size + wt.size + bias_wide.size + B * sH * Qh * N)

    out_phase = pl.pallas_call(
        kernel,
        out_shape=jax.ShapeDtypeStruct((B, sH, Qh, N), jnp.float32),
        grid=(B,),
        in_specs=[
            pl.BlockSpec((1, H, WCin), lambda b: (b, 0, 0)),
            pl.BlockSpec((kH, WCin, N), lambda b: (0, 0, 0)),
            pl.BlockSpec((1, N), lambda b: (0, 0)),
        ],
        out_specs=pl.BlockSpec((1, sH, Qh, N), lambda b: (b, 0, 0, 0)),
        scratch_shapes=[pltpu.VMEM((Qh, N), jnp.float32)],
        compiler_params=pltpu.CompilerParams(
            dimension_semantics=("parallel",),       # batch axis: shard across TCs (v7x)
            vmem_limit_bytes=32 * 1024 * 1024,
        ),
        cost_estimate=pl.CostEstimate(
            flops=flops, transcendentals=0, bytes_accessed=bytes_accessed),
    )(x_rows, wt, bias_wide)

    # ---- phase interleave + NCHW layout glue ----
    # out_phase[b, ph, q, :] holds output row q*sH + ph (rows >= Hout are junk).
    out = jnp.transpose(out_phase, (0, 2, 1, 3)).reshape(B, Qh * sH, N)[:, :Hout, :]
    out = out.reshape(B, Hout, Wout, Cout)
    return jnp.transpose(out, (0, 3, 1, 2))          # (B, Cout, Hout, Wout)


def ref_conv_transpose2d(x, weight, bias, stride):
    """Pure-JAX reference mirroring the PyTorch loop nest exactly."""
    B, Cin, H, W = x.shape
    _, Cout, kH, kW = weight.shape
    sH, sW = stride
    Hout = (H - 1) * sH + kH
    Wout = (W - 1) * sW + kW
    y = jnp.einsum('bihw,iokl->bohwkl', x, weight)        # (B, Cout, H, W, kH, kW)
    out = jnp.zeros((B, Cout, Hout, Wout), jnp.float32)
    for kh in range(kH):
        for kw in range(kW):
            out = out.at[:, :, kh:kh + (H - 1) * sH + 1:sH,
                         kw:kw + (W - 1) * sW + 1:sW].add(y[..., kh, kw])
    return out + bias[None, :, None, None]


if __name__ == "__main__":
    key = jax.random.PRNGKey(0)
    k1, k2, k3 = jax.random.split(key, 3)

    # Small shapes consistent with the module's forward.
    B, Cin, Cout, H, W = 2, 4, 8, 16, 16
    kernel_size = (3, 3)
    stride = (2, 2)

    x = jax.random.normal(k1, (B, Cin, H, W), dtype=jnp.float32)
    # Deterministic synthetic parameters (module's __init__ leaves them uninitialized).
    weight = 0.1 * jax.random.normal(k2, (Cin, Cout) + kernel_size, dtype=jnp.float32)
    bias = 0.1 * jax.random.normal(k3, (Cout,), dtype=jnp.float32)

    out = gpt_conv_transpose2d(x, weight, bias, stride)
    out = jax.block_until_ready(out)

    ref = ref_conv_transpose2d(x, weight, bias, stride)
    Hout = (H - 1) * stride[0] + kernel_size[0]
    Wout = (W - 1) * stride[1] + kernel_size[1]
    assert out.shape == ref.shape == (B, Cout, Hout, Wout)
    assert jnp.allclose(out, ref, atol=1e-4, rtol=1e-4), \
        f"max abs err = {jnp.max(jnp.abs(out - ref))}"

    print("KERNEL_OK")
</pallas_src>

<mosaic_0001>
module attributes {stable_mosaic.version = 11 : i64} {
  func.func @kernel(%arg0: i32, %arg1: memref<1x16x64xf32, #tpu.memory_space<vmem>>, %arg2: memref<3x64x264xf32, #tpu.memory_space<vmem>>, %arg3: memref<1x264xf32, #tpu.memory_space<vmem>>, %arg4: memref<1x2x17x264xf32, #tpu.memory_space<vmem>>, %arg5: memref<17x264xf32, #tpu.memory_space<vmem>>) attributes {dimension_semantics = [#tpu.dimension_semantics<parallel>], iteration_bounds = array<i64: 2>, scalar_prefetch = 0 : i64, scratch_operands = 1 : i64, tpu.core_type = #tpu.core_type<tc>, window_params = [{transform_indices = @transform_0, window_bounds = array<i64: 1, 16, 64>}, {pipeline_mode = #tpu.pipeline_mode<synchronous>, transform_indices = @transform_1, window_bounds = array<i64: 3, 64, 264>}, {pipeline_mode = #tpu.pipeline_mode<synchronous>, transform_indices = @transform_2, window_bounds = array<i64: 1, 264>}, {transform_indices = @transform_3, window_bounds = array<i64: 1, 2, 17, 264>}]} {
    %c0 = arith.constant 0 : index
    %c0_0 = arith.constant 0 : index
    %c0_1 = arith.constant 0 : index
    %0 = vector.load %arg1[%c0, %c0_0, %c0_1] : memref<1x16x64xf32, #tpu.memory_space<vmem>>, vector<1x16x64xf32>
    %1 = vector.shape_cast %0 : vector<1x16x64xf32> to vector<16x64xf32>
    %c0_2 = arith.constant 0 : index
    %c0_3 = arith.constant 0 : index
    %2 = vector.load %arg3[%c0_2, %c0_3] : memref<1x264xf32, #tpu.memory_space<vmem>>, vector<1x264xf32>
    %3 = vector.shape_cast %2 : vector<1x264xf32> to vector<1x264xf32>
    %4 = vector.broadcast %3 : vector<1x264xf32> to vector<17x264xf32>
    %c0_4 = arith.constant 0 : index
    %c0_5 = arith.constant 0 : index
    %5 = vector.load %arg5[%c0_4, %c0_5] : memref<17x264xf32, #tpu.memory_space<vmem>>, vector<17x264xf32>
    tpu.vector_store %arg5[%c0_4, %c0_5], %4 {strides = array<i32>} : memref<17x264xf32, #tpu.memory_space<vmem>>, vector<17x264xf32>,
    %c0_6 = arith.constant 0 : index
    %c0_7 = arith.constant 0 : index
    %c0_8 = arith.constant 0 : index
    %6 = vector.load %arg2[%c0_6, %c0_7, %c0_8] : memref<3x64x264xf32, #tpu.memory_space<vmem>>, vector<1x64x264xf32>
    %7 = vector.shape_cast %6 : vector<1x64x264xf32> to vector<64x264xf32>
    %cst = arith.constant dense<0.000000e+00> : vector<16x264xf32>
    %8 = tpu.matmul %1, %7, %cst {dimension_numbers = #tpu.dot_dimension_numbers<[1], [0], [0], [1], [0, 0, 1, 1], [], []>} : vector<16x64xf32>, vector<64x264xf32>, vector<16x264xf32> -> vector<16x264xf32>
    %c0_9 = arith.constant 0 : index
    %c0_10 = arith.constant 0 : index
    %9 = vector.load %arg5[%c0_9, %c0_10] : memref<17x264xf32, #tpu.memory_space<vmem>>, vector<16x264xf32>
    %10 = arith.addf %9, %8 : vector<16x264xf32>
    %c0_11 = arith.constant 0 : index
    %c0_12 = arith.constant 0 : index
    %11 = vector.load %arg5[%c0_11, %c0_12] : memref<17x264xf32, #tpu.memory_space<vmem>>, vector<16x264xf32>
    tpu.vector_store %arg5[%c0_11, %c0_12], %10 {strides = array<i32>} : memref<17x264xf32, #tpu.memory_space<vmem>>, vector<16x264xf32>,
    %c2 = arith.constant 2 : index
    %c0_13 = arith.constant 0 : index
    %c0_14 = arith.constant 0 : index
    %12 = vector.load %arg2[%c2, %c0_13, %c0_14] : memref<3x64x264xf32, #tpu.memory_space<vmem>>, vector<1x64x264xf32>
    %13 = vector.shape_cast %12 : vector<1x64x264xf32> to vector<64x264xf32>
    %cst_15 = arith.constant dense<0.000000e+00> : vector<16x264xf32>
    %14 = tpu.matmul %1, %13, %cst_15 {dimension_numbers = #tpu.dot_dimension_numbers<[1], [0], [0], [1], [0, 0, 1, 1], [], []>} : vector<16x64xf32>, vector<64x264xf32>, vector<16x264xf32> -> vector<16x264xf32>
    %c1 = arith.constant 1 : index
    %c0_16 = arith.constant 0 : index
    %15 = vector.load %arg5[%c1, %c0_16] : memref<17x264xf32, #tpu.memory_space<vmem>>, vector<16x264xf32>
    %16 = arith.addf %15, %14 : vector<16x264xf32>
    %c1_17 = arith.constant 1 : index
    %c0_18 = arith.constant 0 : index
    %17 = vector.load %arg5[%c1_17, %c0_18] : memref<17x264xf32, #tpu.memory_space<vmem>>, vector<16x264xf32>
    tpu.vector_store %arg5[%c1_17, %c0_18], %16 {strides = array<i32>} : memref<17x264xf32, #tpu.memory_space<vmem>>, vector<16x264xf32>,
    %c0_19 = arith.constant 0 : index
    %c0_20 = arith.constant 0 : index
    %18 = vector.load %arg5[%c0_19, %c0_20] : memref<17x264xf32, #tpu.memory_space<vmem>>, vector<17x264xf32>
    %c0_21 = arith.constant 0 : index
    %c0_22 = arith.constant 0 : index
    %c0_23 = arith.constant 0 : index
    %c0_24 = arith.constant 0 : index
    %19 = vector.load %arg4[%c0_21, %c0_22, %c0_23, %c0_24] : memref<1x2x17x264xf32, #tpu.memory_space<vmem>>, vector<1x1x17x264xf32>
    %20 = vector.shape_cast %19 : vector<1x1x17x264xf32> to vector<17x264xf32>
    %21 = vector.shape_cast %18 : vector<17x264xf32> to vector<1x1x17x264xf32>
    tpu.vector_store %arg4[%c0_21, %c0_22, %c0_23, %c0_24], %21 {strides = array<i32>} : memref<1x2x17x264xf32, #tpu.memory_space<vmem>>, vector<1x1x17x264xf32>,
    %c0_25 = arith.constant 0 : index
    %c0_26 = arith.constant 0 : index
    %22 = vector.load %arg5[%c0_25, %c0_26] : memref<17x264xf32, #tpu.memory_space<vmem>>, vector<17x264xf32>
    tpu.vector_store %arg5[%c0_25, %c0_26], %4 {strides = array<i32>} : memref<17x264xf32, #tpu.memory_space<vmem>>, vector<17x264xf32>,
    %c1_27 = arith.constant 1 : index
    %c0_28 = arith.constant 0 : index
    %c0_29 = arith.constant 0 : index
    %23 = vector.load %arg2[%c1_27, %c0_28, %c0_29] : memref<3x64x264xf32, #tpu.memory_space<vmem>>, vector<1x64x264xf32>
    %24 = vector.shape_cast %23 : vector<1x64x264xf32> to vector<64x264xf32>
    %cst_30 = arith.constant dense<0.000000e+00> : vector<16x264xf32>
    %25 = tpu.matmul %1, %24, %cst_30 {dimension_numbers = #tpu.dot_dimension_numbers<[1], [0], [0], [1], [0, 0, 1, 1], [], []>} : vector<16x64xf32>, vector<64x264xf32>, vector<16x264xf32> -> vector<16x264xf32>
    %c0_31 = arith.constant 0 : index
    %c0_32 = arith.constant 0 : index
    %26 = vector.load %arg5[%c0_31, %c0_32] : memref<17x264xf32, #tpu.memory_space<vmem>>, vector<16x264xf32>
    %27 = arith.addf %26, %25 : vector<16x264xf32>
    %c0_33 = arith.constant 0 : index
    %c0_34 = arith.constant 0 : index
    %28 = vector.load %arg5[%c0_33, %c0_34] : memref<17x264xf32, #tpu.memory_space<vmem>>, vector<16x264xf32>
    tpu.vector_store %arg5[%c0_33, %c0_34], %27 {strides = array<i32>} : memref<17x264xf32, #tpu.memory_space<vmem>>, vector<16x264xf32>,
    %c0_35 = arith.constant 0 : index
    %c0_36 = arith.constant 0 : index
    %29 = vector.load %arg5[%c0_35, %c0_36] : memref<17x264xf32, #tpu.memory_space<vmem>>, vector<17x264xf32>
    %c0_37 = arith.constant 0 : index
    %c1_38 = arith.constant 1 : index
    %c0_39 = arith.constant 0 : index
    %c0_40 = arith.constant 0 : index
    %30 = vector.load %arg4[%c0_37, %c1_38, %c0_39, %c0_40] : memref<1x2x17x264xf32, #tpu.memory_space<vmem>>, vector<1x1x17x264xf32>
    %31 = vector.shape_cast %30 : vector<1x1x17x264xf32> to vector<17x264xf32>
    %32 = vector.shape_cast %29 : vector<17x264xf32> to vector<1x1x17x264xf32>
    tpu.vector_store %arg4[%c0_37, %c1_38, %c0_39, %c0_40], %32 {strides = array<i32>} : memref<1x2x17x264xf32, #tpu.memory_space<vmem>>, vector<1x1x17x264xf32>,
    return
  }
  func.func @transform_0(%arg0: i32) -> (i32, i32, i32) {
    %c0_i32 = arith.constant 0 : i32
    %c0_i32_0 = arith.constant 0 : i32
    %c0_i32_1 = arith.constant 0 : i32
    return %arg0, %c0_i32, %c0_i32_0 : i32, i32, i32
  }
  func.func @transform_1(%arg0: i32) -> (i32, i32, i32) {
    %c0_i32 = arith.constant 0 : i32
    %c0_i32_0 = arith.constant 0 : i32
    %c0_i32_1 = arith.constant 0 : i32
    %c0_i32_2 = arith.constant 0 : i32
    return %c0_i32, %c0_i32_0, %c0_i32_1 : i32, i32, i32
  }
  func.func @transform_2(%arg0: i32) -> (i32, i32) {
    %c0_i32 = arith.constant 0 : i32
    %c0_i32_0 = arith.constant 0 : i32
    %c0_i32_1 = arith.constant 0 : i32
    return %c0_i32, %c0_i32_0 : i32, i32
  }
  func.func @transform_3(%arg0: i32) -> (i32, i32, i32, i32) {
    %c0_i32 = arith.constant 0 : i32
    %c0_i32_0 = arith.constant 0 : i32
    %c0_i32_1 = arith.constant 0 : i32
    %c0_i32_2 = arith.constant 0 : i32
    return %arg0, %c0_i32, %c0_i32_0, %c0_i32_1 : i32, i32, i32, i32
  }
}

</mosaic_0001>

<bundles_post_ra>
// kernel: tpu_custom_call.1
= control target key start
LH: loop header
LB: loop body
LE: loop exit
PB: predicated region body
PF: predicated region fallthrough
CT: control target
= control target key end

     0   :  { %8 = vsyncpa [#allocation4], 0  ;;  %s1649_s0 = inlined_call_operand.hbm [shape: f32[2,16,64], index: 0, kind: input, shape index: {}]   ;;  %s1650_s1 = inlined_call_operand.hbm [shape: f32[3,64,264], index: 1, kind: input, shape index: {}]   ;;  %s1651_s2 = inlined_call_operand.vmem [shape: f32[1,264], index: 2, kind: input, shape index: {}]   ;;  %s1652_s3 = inlined_call_operand.vmem [shape: f32[2,2,17,264], index: 3, kind: output, shape index: {}]  }
   0x1   :  { %10 = vsyncpa [#allocation4 + $0x1], 0 }
   0x2   :  { %11 = vsyncpa [#allocation6], 0  ;;  %s1384_s12 = smov 0   ;;  %s1386_s13 = smov 0  }
   0x3   :  { %s1388_s14 = smov 0   ;;  %s1390_s15 = smov 0  }
   0x4 LB: > { %s1403_s16 = sadd.s32 4294967295, %s1355_s15   ;;  %p37_p0 = scmp.ne.s32.totalorder %s1347_s13, %s1343_s12  ;;  %s1355_s15 = sphi %s1390_s15, %s1667_s15   ;;  %s1351_s14 = sphi %s1388_s14, %s1666_s14   ;;  %s1347_s13 = sphi %s1386_s13, %s1665_s13   ;;  %s1343_s12 = sphi %s1384_s12, %s1664_s12  }
   0x5   : > { %p1653_p1 = scmp.eq.s32.totalorder %s1403_s16, 0  ;;  %p986_p2 = scmp.ge.s32.totalorder %s1355_s15, 1 }
   0x6   : > { %p116_p3 = scmp.lt.s32.totalorder %s1355_s15, 3  ;;  %s1357_s19 = smov [#allocation5]  }
   0x7   : > { %p1411_p4 = por %p1653_p1, %p37_p0  ;;  %s128_s20 = sshll.u32 %s1357_s19, 4  ;;  %s129_s20 = int_to_ptr.vmem [resolvable:$true] %s128_s20 }
   0x8   : > { %p1415_p5 = pnand %p986_p2, %p116_p3  ;;  %s1428_s22 = sadd.s32 1, %s1355_s15  }
   0x9   : > { %s1656_s17 = scalar_select %p1411_p4, 1, 0 }
   0xa   : > { %s1657_s18 = scalar_select %p1415_p5, 1, 0 }
   0xb   : > { %p1210_p6 = pneg %p1415_p5  ;;  %s24_s23 = sadd.s32 1, %s1351_s14 }
   0xc   : > { %s21_s24 = ssub.s32 %s1355_s15, %s1428_s22  ;;  %s1259_s27 = scalar_lea.hbm %s1650_s1, 9216 }
   0xd   : > { %p1423_p7 = pnand %p1210_p6, %p1653_p1  ;;  %p1260_p8 = scmp.ne.s32.totalorder %s1650_s1, %s1259_s27 }
   0xe   : > { %p1266_p12 = scmp.lt.u32.totalorder %s1259_s27, %s1650_s1 }
   0xf   : > { %p1261_p9 = pneg %p1423_p7 }
  0x11   : > { %p1262_p10 = pnand %p1261_p9, %p1260_p8 }
  0x13   : > { %p1263_p11 = pneg %p1262_p10 }
  0x15   : > { %p1268_p13 = pnand %p1266_p12, %p1263_p11 }
  0x17   : > { %1271 = shalt.err (!%p1268_p13)
}
  0x18   : > { %s1272_s5 = scalar_lea.vmem %s129_s20, 9216  ;;  %p1280_p6 = scmp.lt.s32.totalorder %s129_s20, %s129_s20 }
  0x19   : > { %p1273_p0 = scmp.ne.s32.totalorder %s129_s20, %s1272_s5  ;;  %p1281_p1 = scmp.lt.s32.totalorder %s1272_s5, %s1272_s5 }
  0x1b   : > { %p1275_p2 = pnand %p1273_p0, %p1261_p9  ;;  %p1282_p4 = por %p1281_p1, %p1280_p6 }
  0x1d   : > { %p1276_p3 = pneg %p1275_p2 }
  0x1f   : > { %p1283_p5 = pnand %p1282_p4, %p1276_p3 }
  0x21   : > { %1286 = shalt.err (!%p1283_p5)
}
  0x22   : > { %s1358_s6 = smov 384   ;;  %s1359_s7 = smov 24  }
  0x23   : > { %1213 = dma.hbm_to_vmem [thread:$0]  (!%p1423_p7), %s1650_s1, 9216, %s129_s20, [#allocation6], %s1358_s6, %s1358_s6, %s1359_s7  }
  0x24   : > { %p22_p8 = scmp.eq.s32.totalorder %s21_s24, 0  ;;  %p31_p9 = scmp.ne.s32.totalorder %s1351_s14, %s1347_s13 }
  0x25   : > { %p32_p1 = scmp.eq.s32.totalorder %s1355_s15, 0  ;;  %p1219_p4 = scmp.lt.s32.totalorder %s1355_s15, 2 }
  0x26   : > { %s1454_s10 = scalar_select %p22_p8, %s1351_s14, %s24_s23  }
  0x27   : > { %p33_p5 = por %p32_p1, %p31_p9  ;;  %s145_s11 = sand.u32 1, %s1351_s14  }
  0x28   : > { %s989_s12 = sshll.u32 %s145_s11, 4  ;;  %s1019_s19 = sshll.u32 %s1355_s15, 8 }
  0x29   : > { %s1461_s27 = scalar_lea.hbm %s1649_s0, %s1019_s19  ;;  %s149_s20 = scalar_lea.vmem [#allocation3], %s989_s12 }
  0x2a   : > { %s156_s21 = sshll.u32 %s149_s20, 4  ;;  %p1465_p7 = pnand %p1219_p4, %p33_p5  ;;  %s1463_s21 = int_to_ptr.vmem [resolvable:$true] %s156_s21 }
  0x2b   : > { %s1469_s15 = scalar_lea.sflag [#allocation4], %s145_s11  ;;  %s1287_s24 = scalar_lea.hbm %s1461_s27, 256 }
  0x2c   : > { %p1288_p10 = scmp.ne.s32.totalorder %s1461_s27, %s1287_s24  ;;  %p1289_p11 = pneg %p1465_p7 }
  0x2d   : > { %s1292_s30 = scalar_lea.hbm %s1649_s0, 512  ;;  %p1293_p0 = scmp.lt.u32.totalorder %s1461_s27, %s1649_s0 }
  0x2e   : > { %p1290_p12 = pnand %p1289_p11, %p1288_p10  ;;  %p1294_p2 = scmp.lt.u32.totalorder %s1292_s30, %s1287_s24 }
  0x2f   : > { %p1296_p6 = scmp.lt.u32.totalorder %s1287_s24, %s1461_s27 }
  0x30   : > { %p1291_p13 = pneg %p1290_p12  ;;  %p1295_p3 = por %p1294_p2, %p1293_p0 }
  0x32   : > { %p1297_p8 = por %p1296_p6, %p1295_p3 }
  0x34   : > { %p1298_p9 = pnand %p1297_p8, %p1291_p13 }
  0x36   : > { %1301 = shalt.err (!%p1298_p9)
}
  0x37   : > { %s1302_s6 = scalar_lea.vmem %s1463_s21, 256  ;;  %s1360_s7 = smov [#allocation3]  }
  0x38   : > { %p1303_p1 = scmp.ne.s32.totalorder %s1463_s21, %s1302_s6  ;;  %s1307_s8 = sshll.u32 %s1360_s7, 4  ;;  %s1308_s8 = int_to_ptr.vmem [resolvable:$false] %s1307_s8 }
  0x39   : > { %s1309_s9 = scalar_lea.vmem %s1308_s8, 512  ;;  %p1310_p10 = scmp.lt.s32.totalorder %s1463_s21, %s1308_s8 }
  0x3a   : > { %p1305_p4 = pnand %p1303_p1, %p1289_p11  ;;  %p1311_p12 = scmp.lt.s32.totalorder %s1309_s9, %s1302_s6 }
  0x3c   : > { %p1306_p5 = pneg %p1305_p4  ;;  %p1312_p0 = por %p1311_p12, %p1310_p10 }
  0x3e   : > { %p1313_p2 = pnand %p1312_p0, %p1306_p5 }
  0x40   : > { %1316 = shalt.err (!%p1313_p2)
}
  0x41   : > { %s1361_s11 = smov 128   ;;  %s1362_s12 = smov 8  }
  0x42   : > { %1217 = dma.hbm_to_vmem [thread:$0]  (!%p1465_p7), %s1461_s27, 256, %s1463_s21, %s1469_s15, %s1361_s11, %s1361_s11, %s1362_s12  }
  0x43   : > { %p1660_p11 = scmp.ne.s32.totalorder %s1657_s18, 0 }
  0x44   : > { %s170_s19 = sand.u32 (!%p1660_p11), 1, %s1347_s13   ;;  %p1661_p13 = scmp.ne.s32.totalorder (!%p1660_p11), %s1656_s17, 0 }
  0x45   : > { %168 = sbr.rel (%p1660_p11) target bundleno = 363 (0x16b), region = 32  ;;  %s1500_s25 = sshll.u32 (!%p1660_p11), %s170_s19, 4 }
  0x46   : > { %s171_s26 = scalar_lea.sflag (!%p1660_p11), [#allocation4], %s170_s19  ;;  %s174_s20 = scalar_lea.vmem (!%p1660_p11), [#allocation3], %s1500_s25 }
  0x4c   : > { %1334 = dma.done.wait (%p1661_p13), %s171_s26, 256  }
  0x4d   : > { %1336 = vsyncadd (%p1661_p13), %s171_s26, 4294967040  ;;  %p1662_p3 = scmp.eq.s32.totalorder %s1403_s16, 0 }
  0x4f   : > { %1338 = dma.done.wait (%p1662_p3), [#allocation6], 9216   ;;  %p1663_p7 = pmov %p1662_p3 }
  0x50   : > { %v1363_v0 = vmov 0.0   ;;  %v237_v1 = vld [vmem:[#allocation5 + $0x8] sm:$0xff]  ;;  %v240_v2 = vld [vmem:[#allocation5 + $0x20] sm:$0xff]  ;;  %v238_v3 = vld [vmem:[#allocation5 + $0x10] sm:$0xff]  ;;  %vm260_vm0 = vcmask 523264   ;;  %v210_v50 = vlaneseq  ;;  %vm227_vm1 = vcmask 64512  }
  0x51   : > { %1340 = vsyncadd (%p1663_p7), [#allocation6], 4294958080  ;;  %331 = vmatprep.mubr.f32.mxu0 %v1363_v0  ;;  %v1107_v4 = vpack.c.bf16 %v240_v2, %v237_v1  ;;  %v241_v5 = vld [vmem:[#allocation5 + $0x28] sm:$0xff]  ;;  %v236_v6 = vld [vmem:[#allocation5] sm:$0xff]  ;;  %vm234_vm2 = vcmask 57344   ;;  %p201_p6 = scmp.lt.s32.totalorder %s1403_s16, 1 }
  0x52   : > { %v239_v7 = vld [vmem:[#allocation5 + $0x18] sm:$0xff]  ;;  %v1123_v8 = vpack.c.bf16 %v241_v5, %v238_v3  ;;  %v246_v11 = vld [vmem:[#allocation5 + $0x50] sm:$0xff]  ;;  %v244_v12 = vld [vmem:[#allocation5 + $0x40] sm:$0xff]  ;;  %v1524_v61 = vshrl.u32 %v210_v50, 7  ;;  %vm629_vm3 = vcmask 1040384   ;;  %vm659_vm4 = vcmask 64513  }
  0x53   : > { %v1109_v9 = vpack.c.bf16 %v239_v7, %v236_v6  ;;  %v243_v10 = vld [vmem:[#allocation5 + $0x38] sm:$0xff]  ;;  %1108 = vmatprep.subr.bf16.mxu0 %v1107_v4  ;;  %v242_v15 = vld [vmem:[#allocation5 + $0x30] sm:$0xff]  ;;  %v245_v16 = vld [vmem:[#allocation5 + $0x48] sm:$0xff]  ;;  %s1669_s16 = smov (!%p201_p6, %s1403_s16), 1 }
  0x54   : > { %v1111_v13 = vpack.c.bf16 %v246_v11, %v243_v10  ;;  %v247_v14 = vld [vmem:[#allocation5 + $0x58] sm:$0xff]  ;;  %1124 = vmatprep.subr.bf16.mxu1 %v1123_v8  ;;  %v1113_v18 = vpack.c.bf16 %v245_v16, %v242_v15  ;;  %v249_v19 = vld [vmem:[#allocation5 + $0x68] sm:$0xff]  ;;  %v252_v20 = vld [vmem:[#allocation5 + $0x80] sm:$0xff]  ;;  %v212_v3 = vsub.s32 0, %v1524_v61  ;;  %s1203_s27 = smul.u32 144, %s1669_s16 }
  0x55   : > { %1110 = vmatpush1.bf16.msra.mxu0 %v1109_v9  ;;  %v1127_v17 = vpack.c.bf16 %v247_v14, %v244_v12  ;;  %v250_v21 = vld [vmem:[#allocation5 + $0x70] sm:$0xff]  ;;  %1126 = vmatpush3.bf16.msra.mxu1 %v1123_v8  ;;  %v1115_v22 = vpack.c.bf16 %v252_v20, %v249_v19  ;;  %v253_v23 = vld [vmem:[#allocation5 + $0x88] sm:$0xff]  ;;  %v248_v24 = vld [vmem:[#allocation5 + $0x60] sm:$0xff] }
  0x56   : > { %1112 = vmatprep.subr.bf16.mxu0 %v1111_v13  ;;  %v251_v25 = vld [vmem:[#allocation5 + $0x78] sm:$0xff]  ;;  %v1131_v26 = vpack.c.bf16 %v253_v23, %v250_v21  ;;  %v258_v28 = vld [vmem:[#allocation5 + $0xb0] sm:$0xff]  ;;  %v256_v29 = vld [vmem:[#allocation5 + $0xa0] sm:$0xff]  ;;  %s1592_s23 = scalar_lea.vmem %s1652_s3, %s1203_s27 }
  0x57   : > { %1128 = vmatprep.subr.bf16.mxu1 %v1127_v17  ;;  %v255_v27 = vld [vmem:[#allocation5 + $0x98] sm:$0xff]  ;;  %v1117_v31 = vpack.c.bf16 %v251_v25, %v248_v24  ;;  %v1514_v32 = vld [vmem:[%s174_s20] sm:$0xff]  ;;  %v257_v35 = vld [vmem:[#allocation5 + $0xa8] sm:$0xff] }
  0x58   : > { %v259_v30 = vld [vmem:[#allocation5 + $0xb8] sm:$0xff]  ;;  %v1119_v33 = vpack.c.bf16 %v258_v28, %v255_v27  ;;  %v254_v34 = vld [vmem:[#allocation5 + $0x90] sm:$0xff]  ;;  %1066 = vmatprep.mubr.msk.f32.mxu1 %vm260_vm0, %v1514_v32  ;;  %v439_v37 = vld [vmem:[#allocation5 + $0x188] sm:$0xff] }
  0x59   : > { %1114 = vmatpush1.bf16.msra.mxu0 %v1113_v18  ;;  %1130 = vmatpush3.bf16.msra.mxu1 %v1127_v17  ;;  %v1135_v36 = vpack.c.bf16 %v259_v30, %v256_v29  ;;  %v442_v38 = vld [vmem:[#allocation5 + $0x1a0] sm:$0xff]  ;;  %v440_v39 = vld [vmem:[#allocation5 + $0x190] sm:$0xff]  ;;  %v443_v40 = vld [vmem:[#allocation5 + $0x1a8] sm:$0xff]  ;;  %v1121_v41 = vpack.c.bf16 %v257_v35, %v254_v34 }
  0x5a   : > { %1116 = vmatprep.subr.bf16.mxu0 %v1115_v22  ;;  %1132 = vmatprep.subr.bf16.mxu1 %v1131_v26  ;;  %v1139_v42 = vpack.c.bf16 %v442_v38, %v439_v37  ;;  %v438_v43 = vld [vmem:[#allocation5 + $0x180] sm:$0xff]  ;;  %v441_v44 = vld [vmem:[#allocation5 + $0x198] sm:$0xff]  ;;  %v1155_v45 = vpack.c.bf16 %v443_v40, %v440_v39  ;;  %v448_v47 = vld [vmem:[#allocation5 + $0x1d0] sm:$0xff] }
  0x5b   : > { %v445_v46 = vld [vmem:[#allocation5 + $0x1b8] sm:$0xff]  ;;  %v446_v48 = vld [vmem:[#allocation5 + $0x1c0] sm:$0xff]  ;;  %v1141_v51 = vpack.c.bf16 %v441_v44, %v438_v43  ;;  %v444_v54 = vld [vmem:[#allocation5 + $0x1b0] sm:$0xff] }
  0x5c   : > { %v449_v49 = vld [vmem:[#allocation5 + $0x1d8] sm:$0xff]  ;;  %v1143_v53 = vpack.c.bf16 %v448_v47, %v445_v46  ;;  %v447_v55 = vld [vmem:[#allocation5 + $0x1c8] sm:$0xff]  ;;  %v454_v58 = vld [vmem:[#allocation5 + $0x200] sm:$0xff] }
  0x5d   : > { %1118 = vmatpush1.bf16.msra.mxu0 %v1117_v31  ;;  %1134 = vmatpush3.bf16.msra.mxu1 %v1131_v26  ;;  %v1520_v52 = vld [vmem:[%s174_s20 + $0x8] sm:$0xff]  ;;  %v1159_v56 = vpack.c.bf16 %v449_v49, %v446_v48  ;;  %v452_v59 = vld [vmem:[#allocation5 + $0x1f0] sm:$0xff]  ;;  %v1145_v62 = vpack.c.bf16 %v447_v55, %v444_v54  ;;  %v450_v1 = vld [vmem:[#allocation5 + $0x1e0] sm:$0xff]  ;;  %v220_v55 = vsub.s32 2, %v1524_v61 }
  0x5e   : > { %1120 = vmatprep.subr.bf16.mxu0 %v1119_v33  ;;  %1136 = vmatprep.subr.bf16.mxu1 %v1135_v36  ;;  %v451_v57 = vld [vmem:[#allocation5 + $0x1e8] sm:$0xff]  ;;  %v453_v2 = vld [vmem:[#allocation5 + $0x1f8] sm:$0xff]  ;;  %v460_v6 = vld [vmem:[#allocation5 + $0x230] sm:$0xff] }
  0x5f   : > { %v455_v60 = vld [vmem:[#allocation5 + $0x208] sm:$0xff]  ;;  %v1147_v63 = vpack.c.bf16 %v454_v58, %v451_v57  ;;  %v457_v5 = vld [vmem:[#allocation5 + $0x218] sm:$0xff]  ;;  %v458_v7 = vld [vmem:[#allocation5 + $0x220] sm:$0xff]  ;;  %v1149_v9 = vpack.c.bf16 %v453_v2, %v450_v1 }
  0x60   : > { %v1163_v4 = vpack.c.bf16 %v455_v60, %v452_v59  ;;  %v461_v8 = vld [vmem:[#allocation5 + $0x238] sm:$0xff]  ;;  %v1151_v11 = vpack.c.bf16 %v460_v6, %v457_v5  ;;  %v456_v12 = vld [vmem:[#allocation5 + $0x210] sm:$0xff]  ;;  %v459_v13 = vld [vmem:[#allocation5 + $0x228] sm:$0xff] }
  0x61   : > { %1122 = vmatpush1.bf16.msra.mxu0 %v1121_v41  ;;  %1138 = vmatpush3.bf16.msra.mxu1 %v1135_v36  ;;  %v1538_v10 = vld [vmem:[%s1651_s2] sm:$0x7]  ;;  %v1167_v15 = vpack.c.bf16 %v461_v8, %v458_v7  ;;  %v696_v16 = vld [vmem:[#allocation5 + $0xc8] sm:$0xff]  ;;  %v699_v17 = vld [vmem:[#allocation5 + $0xe0] sm:$0xff]  ;;  %v1153_v20 = vpack.c.bf16 %v459_v13, %v456_v12 }
  0x62   : > { %1140 = vmatprep.subr.bf16.mxu0 %v1139_v42  ;;  %1156 = vmatprep.subr.bf16.mxu1 %v1155_v45  ;;  %v1541_v14 = vrot.slane %v1538_v10, %v212_v3  ;;  %v697_v18 = vld [vmem:[#allocation5 + $0xd0] sm:$0xff]  ;;  %v700_v19 = vld [vmem:[#allocation5 + $0xe8] sm:$0xff]  ;;  %v1171_v21 = vpack.c.bf16 %v699_v17, %v696_v16  ;;  %v695_v22 = vld [vmem:[#allocation5 + $0xc0] sm:$0xff] }
  0x63   : > { %v698_v23 = vld [vmem:[#allocation5 + $0xd8] sm:$0xff]  ;;  %v1187_v25 = vpack.c.bf16 %v700_v19, %v697_v18  ;;  %v705_v26 = vld [vmem:[#allocation5 + $0x110] sm:$0xff]  ;;  %v703_v27 = vld [vmem:[#allocation5 + $0x100] sm:$0xff] }
  0x64   : > { %996 = vmatmul.mubr.msk.f32.vlgmr.msra.gmra.mrb[0].mxu0 %vm260_vm0, %v1514_v32  ;;  %1067 = vmatmul.mubr.msk.f32.vlgmr.msra.gmra.mrb[0].mxu1 %vm260_vm0, %v1520_v52  ;;  %232 = vst [vmem:[#allocation2 + $0x30] sm:$0x1] %v1541_v14  ;;  %v702_v24 = vld [vmem:[#allocation5 + $0xf8] sm:$0xff]  ;;  %v1173_v29 = vpack.c.bf16 %v698_v23, %v695_v22  ;;  %v701_v31 = vld [vmem:[#allocation5 + $0xf0] sm:$0xff]  ;;  %v704_v33 = vld [vmem:[#allocation5 + $0x108] sm:$0xff] }
  0x65   : > { %1142 = vmatpush1.bf16.msra.mxu0 %v1141_v51  ;;  %1158 = vmatpush3.bf16.msra.mxu1 %v1155_v45  ;;  %v706_v28 = vld [vmem:[#allocation5 + $0x118] sm:$0xff]  ;;  %v1175_v30 = vpack.c.bf16 %v705_v26, %v702_v24  ;;  %v708_v34 = vld [vmem:[#allocation5 + $0x128] sm:$0xff]  ;;  %v711_v36 = vld [vmem:[#allocation5 + $0x140] sm:$0xff]  ;;  %v1177_v39 = vpack.c.bf16 %v704_v33, %v701_v31 }
  0x66   : > { %1144 = vmatprep.subr.bf16.mxu0 %v1143_v53  ;;  %1160 = vmatprep.subr.bf16.mxu1 %v1159_v56  ;;  %v1191_v35 = vpack.c.bf16 %v706_v28, %v703_v27  ;;  %v709_v37 = vld [vmem:[#allocation5 + $0x130] sm:$0xff]  ;;  %v712_v38 = vld [vmem:[#allocation5 + $0x148] sm:$0xff]  ;;  %v1179_v40 = vpack.c.bf16 %v711_v36, %v708_v34  ;;  %v707_v41 = vld [vmem:[#allocation5 + $0x120] sm:$0xff] }
  0x67   : > { %337 = vmatprep.mubr.f32.mxu0 %v1363_v0  ;;  %1085 = vmatprep.mubr.msk.f32.mxu1 %vm260_vm0, %v1514_v32  ;;  %v710_v42 = vld [vmem:[#allocation5 + $0x138] sm:$0xff]  ;;  %v1195_v44 = vpack.c.bf16 %v712_v38, %v709_v37  ;;  %v717_v45 = vld [vmem:[#allocation5 + $0x170] sm:$0xff]  ;;  %v715_v46 = vld [vmem:[#allocation5 + $0x160] sm:$0xff] }
  0x68   : > { %997 = vmatmul.mubr.msk.f32.gmra.mrb[2].mxu0 %vm260_vm0, %v1520_v52  ;;  %v714_v43 = vld [vmem:[#allocation5 + $0x158] sm:$0xff]  ;;  %v1181_v48 = vpack.c.bf16 %v710_v42, %v707_v41  ;;  %v713_v50 = vld [vmem:[#allocation5 + $0x150] sm:$0xff]  ;;  %v716_v51 = vld [vmem:[#allocation5 + $0x168] sm:$0xff] }
  0x69   : > { %1146 = vmatpush1.bf16.msra.mxu0 %v1145_v62  ;;  %526 = vmatprep.mubr.f32.mxu0 %v1363_v0  ;;  %v718_v47 = vld [vmem:[#allocation5 + $0x178] sm:$0xff]  ;;  %v1183_v49 = vpack.c.bf16 %v717_v45, %v714_v43  ;;  %v1185_v54 = vpack.c.bf16 %v716_v51, %v713_v50 }
  0x6a   : > { %1162 = vmatpush3.bf16.msra.mxu1 %v1159_v56  ;;  %1148 = vmatprep.subr.bf16.mxu0 %v1147_v63  ;;  %v1199_v53 = vpack.c.bf16 %v718_v47, %v715_v46  ;;  %v1563_v56 = vrot.slane %v1538_v10, %v220_v55 }
  0x6b   : > { %1164 = vmatprep.subr.bf16.mxu1 %v1163_v4  ;;  %v620_v22 = vld [vmem:[#allocation2 + $0x30] sm:$0x1] }
  0x6c   : > { %231 = vst.msk [vmem:[#allocation2 + $0x28] sm:$0xff] %vm227_vm1, %v1563_v56  ;;  %228 = vst.msk [vmem:[#allocation2 + $0x10] sm:$0xff] %vm227_vm1, %v1563_v56 }
  0x6d   : > { %1150 = vmatpush1.bf16.msra.mxu0 %v1149_v9  ;;  %235 = vst.msk [vmem:[#allocation2 + $0x40] sm:$0x1] %vm234_vm2, %v1563_v56 }
  0x6e   : > { %1166 = vmatpush3.bf16.msra.mxu1 %v1163_v4  ;;  %1152 = vmatprep.subr.bf16.mxu0 %v1151_v11 }
  0x6f   : > { %1168 = vmatprep.subr.bf16.mxu1 %v1167_v15 }
  0x71   : > { %1154 = vmatpush1.bf16.msra.mxu0 %v1153_v20 }
  0x72   : > { %1170 = vmatpush3.bf16.msra.mxu1 %v1167_v15  ;;  %1172 = vmatprep.subr.bf16.mxu0 %v1171_v21 }
  0x73   : > { %1188 = vmatprep.subr.bf16.mxu1 %v1187_v25  ;;  %v421_v58 = vld [vmem:[#allocation2 + $0x10] sm:$0xff] }
  0x74   : > { %1000 = vmatmul.mubr.msk.f32.vlgmr.msra.gmra.mrb[4].mxu0 %vm260_vm0, %v1514_v32  ;;  %v622_v7 = vld [vmem:[#allocation2 + $0x40] sm:$0x1] }
  0x75   : > { %1086 = vmatmul.mubr.msk.f32.vlgmr.msra.gmra.mrb[2].mxu1 %vm260_vm0, %v1520_v52  ;;  %532 = vmatprep.mubr.f32.mxu0 %v1363_v0 }
  0x76   : > { %1174 = vmatpush1.bf16.msra.mxu0 %v1173_v29  ;;  %1190 = vmatpush3.bf16.msra.mxu1 %v1187_v25 }
  0x77   : > { %1176 = vmatprep.subr.bf16.mxu0 %v1175_v30  ;;  %1192 = vmatprep.subr.bf16.mxu1 %v1191_v35 }
  0x78   : > { %1001 = vmatmul.mubr.msk.f32.gmra.mrb[6].mxu0 %vm260_vm0, %v1520_v52  ;;  %1104 = vmatprep.mubr.msk.f32.mxu1 %vm260_vm0, %v1514_v32 }
  0x79   : > { %783 = vmatprep.mubr.f32.mxu0 %v1363_v0 }
  0x7a   : > { %1178 = vmatpush1.bf16.msra.mxu0 %v1177_v39  ;;  %1194 = vmatpush3.bf16.msra.mxu1 %v1191_v35 }
  0x7b   : > { %1180 = vmatprep.subr.bf16.mxu0 %v1179_v40  ;;  %1196 = vmatprep.subr.bf16.mxu1 %v1195_v44 }
  0x7e   : > { %1182 = vmatpush1.bf16.msra.mxu0 %v1181_v48  ;;  %1198 = vmatpush3.bf16.msra.mxu1 %v1195_v44 }
  0x7f   : > { %1184 = vmatprep.subr.bf16.mxu0 %v1183_v49  ;;  %1200 = vmatprep.subr.bf16.mxu1 %v1199_v53 }
  0x82   : > { %1186 = vmatpush1.bf16.msra.mxu0 %v1185_v54  ;;  %1202 = vmatpush3.bf16.msra.mxu1 %v1199_v53 }
  0x85   : > { %1004 = vmatmul.mubr.msk.f32.vlgmr.msra.gmra.mrb[8].mxu0 %vm260_vm0, %v1514_v32  ;;  %1105 = vmatmul.mubr.msk.f32.vlgmr.msra.gmra.mrb[4].mxu1 %vm260_vm0, %v1520_v52  ;;  %v216_v32 = vsub.s32 1, %v1524_v61 }
  0x86   : > { %789 = vmatprep.mubr.f32.mxu0 %v1363_v0  ;;  %v424_v0 = vld [vmem:[#allocation2 + $0x28] sm:$0xff] }
  0x87   : > { %v1571_v57 = vrot.slane %v1538_v10, %v216_v32 }
  0x89   : > { %1005 = vmatmul.mubr.msk.f32.gmra.mrb[10].mxu0 %vm260_vm0, %v1520_v52  ;;  %233 = vst [vmem:[#allocation2 + $0x38] sm:$0x1] %v1571_v57 }
  0x90   : > { %v621_v28 = vld [vmem:[#allocation2 + $0x38] sm:$0x1] }
 0x137   : > { %v333_v52 = vpop.f32.mrb[0].mxu0  ;;  %v1068_v62 = vpop.f32.mrb[0].mxu1 }
 0x138   : > { %v425_v59 = vadd.f32 %v333_v52, %v1541_v14  ;;  %v335_v60 = vpop.f32.mrb[1].mxu0  ;;  %v430_v63 = vadd.f32 %v1068_v62, %v424_v0  ;;  %v410_v1 = vpop.f32.mrb[1].mxu1 }
 0x139   : > { %v426_v61 = vadd.f32 %v335_v60, %v1571_v57  ;;  %v427_v2 = vadd.f32 %v421_v58, %v410_v1 }
 0x13a   : > { %431 = vst [vmem:[#allocation2] sm:$0xff] %v425_v59  ;;  %436 = vst.msk [vmem:[#allocation2 + $0x28] sm:$0xff] %vm227_vm1, %v430_v63 }
 0x13b   : > { %432 = vst [vmem:[#allocation2 + $0x8] sm:$0xff] %v426_v61  ;;  %v339_v3 = vpop.f32.mrb[2].mxu0  ;;  %433 = vst.msk [vmem:[#allocation2 + $0x10] sm:$0xff] %vm227_vm1, %v427_v2 }
 0x13c   : > { %v341_v4 = vpop.f32.mrb[3].mxu0  ;;  %v428_v29 = vadd.f32 %v339_v3, %v1541_v14 }
 0x13d   : > { %v429_v33 = vadd.f32 %v341_v4, %v1571_v57 }
 0x141   : > { %v614_v6 = vld [vmem:[#allocation2] sm:$0xfe]  ;;  %v619_v23 = vld [vmem:[#allocation2 + $0x28] sm:$0xff] }
 0x142   : > { %v615_v11 = vld [vmem:[#allocation2 + $0x8] sm:$0xfe]  ;;  %v616_v20 = vld [vmem:[#allocation2 + $0x10] sm:$0xfe] }
 0x147   : > { %v528_v5 = vpop.f32.mrb[4].mxu0 }
 0x148   : > { %v630_v8 = vrot.slane %v528_v5, 7  ;;  %v1087_v9 = vpop.f32.mrb[2].mxu1  ;;  %v530_v10 = vpop.f32.mrb[5].mxu0 }
 0x149   : > { %v637_v12 = vrot.slane %v1087_v9, 7  ;;  %v631_v13 = vrot.slane %v530_v10, 7  ;;  %v605_v15 = vpop.f32.mrb[3].mxu1 }
 0x14a   : > { %v648_v16 = vadd.f32 %v630_v8, %v614_v6  ;;  %v632_v17 = vrot.slane %v605_v15, 7 }
 0x14b   : > { %v656_v18 = vadd.f32 %v637_v12, %v622_v7  ;;  %v649_v19 = vadd.f32 %v631_v13, %v615_v11  ;;  %v534_v21 = vpop.f32.mrb[6].mxu0 }
 0x14c   : > { %657 = vst [vmem:[#allocation2] sm:$0xfe] %v648_v16  ;;  %v638_v24 = vsel %vm629_vm3, %v632_v17, %v637_v12  ;;  %v650_v25 = vadd.f32 %v632_v17, %v616_v20  ;;  %v633_v26 = vrot.slane %v534_v21, 7  ;;  %v536_v27 = vpop.f32.mrb[7].mxu0 }
 0x14d   : > { %666 = vst.msk [vmem:[#allocation2 + $0x40] sm:$0x1] %vm234_vm2, %v656_v18  ;;  %658 = vst [vmem:[#allocation2 + $0x8] sm:$0xfe] %v649_v19  ;;  %v653_v30 = vadd.f32 %v638_v24, %v619_v23  ;;  %v635_v31 = vrot.slane %v536_v27, 7 }
 0x14e   : > { %660 = vst.msk [vmem:[#allocation2 + $0x10] sm:$0xfe] %vm659_vm4, %v650_v25  ;;  %v634_v34 = vsel %vm629_vm3, %v630_v8, %v633_v26  ;;  %v654_v35 = vadd.f32 %v633_v26, %v620_v22 }
 0x14f   : > { %663 = vst.msk [vmem:[#allocation2 + $0x28] sm:$0xff] %vm227_vm1, %v653_v30  ;;  %v651_v36 = vadd.f32 %v634_v34, %v428_v29  ;;  %v636_v37 = vsel %vm629_vm3, %v631_v13, %v635_v31  ;;  %v655_v38 = vadd.f32 %v635_v31, %v621_v28 }
 0x150   : > { %664 = vst [vmem:[#allocation2 + $0x30] sm:$0x1] %v654_v35  ;;  %v652_v39 = vadd.f32 %v636_v37, %v429_v33 }
 0x151   : > { %665 = vst [vmem:[#allocation2 + $0x38] sm:$0x1] %v655_v38  ;;  %679 = vst [vmem:[%s1592_s23 + $0x18] sm:$0xff] %v651_v36 }
 0x152   : > { %680 = vst [vmem:[%s1592_s23 + $0x20] sm:$0xff] %v652_v39 }
 0x153   : > { %v667_v40 = vld [vmem:[#allocation2] sm:$0xff] }
 0x154   : > { %v675_v41 = vld [vmem:[#allocation2 + $0x40] sm:$0x1]  ;;  %676 = vst [vmem:[%s1592_s23] sm:$0xff] %v667_v40  ;;  %v668_v42 = vld [vmem:[#allocation2 + $0x8] sm:$0xff] }
 0x155   : > { %684 = vst.msk [vmem:[%s1592_s23 + $0x40] sm:$0x1] %vm234_vm2, %v675_v41  ;;  %693 = vst.msk [vmem:[#allocation2 + $0x40] sm:$0x1] %vm234_vm2, %v1563_v56  ;;  %v669_v43 = vld [vmem:[#allocation2 + $0x10] sm:$0xff] }
 0x156   : > { %677 = vst [vmem:[%s1592_s23 + $0x8] sm:$0xff] %v668_v42  ;;  %678 = vst.msk [vmem:[%s1592_s23 + $0x10] sm:$0xff] %vm227_vm1, %v669_v43  ;;  %v672_v44 = vld [vmem:[#allocation2 + $0x28] sm:$0xff] }
 0x157   : > { %687 = vst.msk [vmem:[#allocation2 + $0x10] sm:$0xff] %vm227_vm1, %v1563_v56  ;;  %v673_v45 = vld [vmem:[#allocation2 + $0x30] sm:$0x1]  ;;  %681 = vst.msk [vmem:[%s1592_s23 + $0x28] sm:$0xff] %vm227_vm1, %v672_v44 }
 0x158   : > { %690 = vst.msk [vmem:[#allocation2 + $0x28] sm:$0xff] %vm227_vm1, %v1563_v56  ;;  %682 = vst [vmem:[%s1592_s23 + $0x30] sm:$0x1] %v673_v45  ;;  %v674_v46 = vld [vmem:[#allocation2 + $0x38] sm:$0x1]  ;;  %v785_v47 = vpop.f32.mrb[8].mxu0 }
 0x159   : > { %691 = vst [vmem:[#allocation2 + $0x30] sm:$0x1] %v1541_v14  ;;  %v1106_v48 = vpop.f32.mrb[4].mxu1  ;;  %683 = vst [vmem:[%s1592_s23 + $0x38] sm:$0x1] %v674_v46  ;;  %v877_v49 = vadd.f32 %v785_v47, %v1541_v14  ;;  %v787_v50 = vpop.f32.mrb[9].mxu0 }
 0x15a   : > { %692 = vst [vmem:[#allocation2 + $0x38] sm:$0x1] %v1571_v57  ;;  %v862_v51 = vpop.f32.mrb[5].mxu1  ;;  %v878_v53 = vadd.f32 %v787_v50, %v1571_v57 }
 0x15b   : > { %883 = vst [vmem:[#allocation2] sm:$0xff] %v877_v49  ;;  %1008 = vst [vmem:[%s1592_s23 + $0x48] sm:$0xff] %v877_v49 }
 0x15c   : > { %v897_v54 = vld [vmem:[#allocation2 + $0x40] sm:$0x1]  ;;  %884 = vst [vmem:[#allocation2 + $0x8] sm:$0xff] %v878_v53  ;;  %1009 = vst [vmem:[%s1592_s23 + $0x50] sm:$0xff] %v878_v53  ;;  %v791_v55 = vpop.f32.mrb[10].mxu0 }
 0x15d   : > { %1016 = vst.msk [vmem:[%s1592_s23 + $0x88] sm:$0x1] %vm234_vm2, %v897_v54  ;;  %v880_v56 = vadd.f32 %v791_v55, %v1541_v14  ;;  %v793_v32 = vpop.f32.mrb[11].mxu0 }
 0x15e   : > { %v873_v0 = vld [vmem:[#allocation2 + $0x10] sm:$0xff]  ;;  %v881_v58 = vadd.f32 %v793_v32, %v1571_v57 }
 0x15f   : > { %v876_v52 = vld [vmem:[#allocation2 + $0x28] sm:$0xff]  ;;  %v879_v59 = vadd.f32 %v873_v0, %v862_v51  ;;  %1011 = vst [vmem:[%s1592_s23 + $0x60] sm:$0xff] %v880_v56 }
 0x160   : > { %v895_v60 = vld [vmem:[#allocation2 + $0x30] sm:$0x1]  ;;  %v882_v62 = vadd.f32 %v1106_v48, %v876_v52  ;;  %1012 = vst [vmem:[%s1592_s23 + $0x68] sm:$0xff] %v881_v58 }
 0x161   : > { %1014 = vst [vmem:[%s1592_s23 + $0x78] sm:$0x1] %v895_v60  ;;  %v896_v61 = vld [vmem:[#allocation2 + $0x38] sm:$0x1]  ;;  %885 = vst.msk [vmem:[#allocation2 + $0x10] sm:$0xff] %vm227_vm1, %v879_v59 }
 0x162   : > { %1015 = vst [vmem:[%s1592_s23 + $0x80] sm:$0x1] %v896_v61  ;;  %888 = vst.msk [vmem:[#allocation2 + $0x28] sm:$0xff] %vm227_vm1, %v882_v62 }
 0x168   : > { %v891_v14 = vld [vmem:[#allocation2 + $0x10] sm:$0xff] }
 0x169   : > { %v894_v63 = vld [vmem:[#allocation2 + $0x28] sm:$0xff]  ;;  %1010 = vst.msk [vmem:[%s1592_s23 + $0x58] sm:$0xff] %vm227_vm1, %v891_v14 }
 0x16a   : > { %1013 = vst.msk [vmem:[%s1592_s23 + $0x70] sm:$0xff] %vm227_vm1, %v894_v63 }
 0x16b PF: > { %p14_p8 = scmp.ge.s32.totalorder %s1428_s22, 4   ;;  %s1664_s12 = smov %s1347_s13 }
 0x16c   : > { %s1665_s13 = smov %s1351_s14  ;;  %s1666_s14 = smov %s1454_s10 }
 0x16d   : > { %s1667_s15 = smov %s1428_s22  ;;  %16 = sbr.rel (!%p14_p8) target bundleno = 4 (0x4), region = 79 }
 0x174   :  { %929 = vsyncpa [#allocation4], 1 }
 0x175   :  { %931 = vsyncpa [#allocation4 + $0x1], 1 }
 0x176   :  { %932 = vsyncpa [#allocation6], 1 }

</bundles_post_ra>
